<compile_context>
chip_gen: v6e
topology: v6e:2x2x1
jax: 0.10.0
libtpu: 0.0.40
codegen_flags: <defaults>
</compile_context>

<pallas_src>
import functools
import math

import jax
import jax.numpy as jnp
from jax import lax
from jax.experimental import pallas as pl
from jax.experimental.pallas import tpu as pltpu


# --------------------------- chip-aware knobs --------------------------------
def _tpu_generation():
    try:
        kind = jax.devices()[0].device_kind.lower()
    except Exception:
        return "unknown"
    if "v7" in kind or "7x" in kind:
        return "v7"
    if "v6" in kind:
        return "v6"
    if "v5" in kind:
        return "v5"
    return "unknown"


def _vmem_limit_bytes():
    mib = 1024 * 1024
    try:
        cap = int(getattr(pltpu.get_tpu_info(), "vmem_capacity_bytes", 64 * mib))
    except Exception:
        cap = 64 * mib
    # ~16 MiB headroom below physical capacity; never ask above 100 MiB
    # (v5e/v6e have 128 MiB physical, v7x only 64 MiB).
    return int(max(32 * mib, min(cap - 16 * mib, 100 * mib)))


def _default_tiles(n, chip):
    """Pick (tq, tk): 256-row tiles fill the v6e/v7x MXU, v5e MXU is 128-row."""
    if n % 128 == 0:
        t = 256 if (chip in ("v6", "v7") and n % 256 == 0) else 128
        return t, t
    if n <= 512:
        return n, n            # full-extent blocks (legal BlockSpec), no padding
    return 128, 128            # large unaligned N -> pad + mask path


# ----------------------------- Pallas kernel ---------------------------------
def _flash_attn_kernel(xq_ref, xk_ref, v_ref, o_ref, m_sc, l_sc, acc_sc,
                       *opt_scratch, scale, n_valid, exp_dtype):
    # xq_ref : (bb, tq, Dqk)   bf16  query-side tokens (already dqk-narrowed)
    # xk_ref : (bb, tk, Dqk)   bf16  key-side tokens
    # v_ref  : (bb, tk, C_out) bf16  precomputed V = tokens @ Wv^T (to_v hoisted)
    # o_ref  : (bb, C_out, tq) f32   lane-dense (channels-first) output
    # m_sc/l_sc: (bb, tq, 1) f32 running max / denom; acc_sc: (bb, tq, C_out) f32
    # opt_scratch: optional (bb, tq, Dqk) bf16 cache of the pre-scaled q tile.
    kv = pl.program_id(2)
    q_cache = opt_scratch[0] if opt_scratch else None

    @pl.when(kv == 0)
    def _():
        m_sc[...] = jnp.full_like(m_sc, -jnp.inf)
        l_sc[...] = jnp.zeros_like(l_sc)
        acc_sc[...] = jnp.zeros_like(acc_sc)
        if q_cache is not None:
            # Fold the softmax scale into q once per q-tile (not per kv step).
            q_cache[...] = (xq_ref[...].astype(jnp.float32)
                            * scale).astype(jnp.bfloat16)

    q = q_cache[...] if q_cache is not None else xq_ref[...]
    k = xk_ref[...]

    # Scores: bf16 MXU operands, f32 accumulation.
    s = jnp.einsum("bqd,bkd->bqk", q, k,
                   preferred_element_type=jnp.float32)          # (bb, tq, tk)

    if n_valid is not None:
        # Mask the zero-padded KV columns before the online-softmax max/exp.
        tk = k.shape[1]
        col = kv * tk + lax.broadcasted_iota(jnp.int32, s.shape, dimension=2)
        s = jnp.where(col < n_valid, s, -jnp.inf)

    # Online-softmax update (flash-attention pattern).
    m_prev = m_sc[...]
    m_new = jnp.maximum(m_prev, jnp.max(s, axis=-1, keepdims=True))
    alpha = jnp.exp(m_prev - m_new)
    # exp through the EUP; bf16 where the chip has a bf16 EUP path (v6e/v7x).
    p = jnp.exp((s - m_new).astype(exp_dtype))
    l_sc[...] = alpha * l_sc[...] + jnp.sum(p.astype(jnp.float32),
                                            axis=-1, keepdims=True)
    acc_sc[...] = alpha * acc_sc[...] + jnp.einsum(
        "bqk,bkc->bqc", p.astype(jnp.bfloat16), v_ref[...],
        preferred_element_type=jnp.float32)
    m_sc[...] = m_new

    # to_out is identity: output = normalized accumulator, transposed once so
    # the stored block is lane-dense (tq on the 128-lane axis, not C_out).
    @pl.when(kv == pl.num_programs(2) - 1)
    def _():
        out = acc_sc[...] * pl.reciprocal(l_sc[...], approx=True)
        o_ref[...] = jnp.transpose(out, (0, 2, 1)).astype(o_ref.dtype)


def attention_from_conv_tokens(qk, v, *, scale, tq=None, tk=None, bb=1):
    """qk: (B, N, Dqk) bf16 tokens (already narrowed to the q/k feature dim).
       v : (B, N, C_out) bf16 precomputed value tokens (tokens @ Wv^T).
       Returns (B, C_out, N) f32 attention output (channels-first, lane-dense)."""
    B, N, Dqk = qk.shape
    C_out = v.shape[-1]
    assert v.shape == (B, N, C_out)
    assert B % bb == 0
    scale = float(scale)

    chip = _tpu_generation()
    dq, dk = _default_tiles(N, chip)
    tq = dq if tq is None else tq
    tk = dk if tk is None else tk

    # Pad N so both tile sizes divide it; padded KV columns are masked in-kernel
    # and padded query rows are sliced off below.
    step = math.lcm(tq, tk)
    n_pad = -(-N // step) * step
    n_valid = None
    if n_pad != N:
        qk = jnp.pad(qk, ((0, 0), (0, n_pad - N), (0, 0)))
        v = jnp.pad(v, ((0, 0), (0, n_pad - N), (0, 0)))
        n_valid = N

    use_q_cache = scale != 1.0
    exp_dtype = jnp.bfloat16 if chip in ("v6", "v7") else jnp.float32

    grid = (B // bb, n_pad // tq, n_pad // tk)
    kernel = functools.partial(_flash_attn_kernel, scale=scale,
                               n_valid=n_valid, exp_dtype=exp_dtype)

    scratch = [
        pltpu.VMEM((bb, tq, 1), jnp.float32),        # running max
        pltpu.VMEM((bb, tq, 1), jnp.float32),        # running denominator
        pltpu.VMEM((bb, tq, C_out), jnp.float32),    # output accumulator
    ]
    if use_q_cache:
        scratch.append(pltpu.VMEM((bb, tq, Dqk), jnp.bfloat16))  # scaled q tile

    out = pl.pallas_call(
        kernel,
        out_shape=jax.ShapeDtypeStruct((B, C_out, n_pad), jnp.float32),
        grid=grid,
        in_specs=[
            pl.BlockSpec((bb, tq, Dqk), lambda b, qi, ki: (b, qi, 0)),   # q tokens
            pl.BlockSpec((bb, tk, Dqk), lambda b, qi, ki: (b, ki, 0)),   # k tokens
            pl.BlockSpec((bb, tk, C_out), lambda b, qi, ki: (b, ki, 0)),  # V tokens
        ],
        out_specs=pl.BlockSpec((bb, C_out, tq), lambda b, qi, ki: (b, 0, qi)),
        scratch_shapes=scratch,
        compiler_params=pltpu.CompilerParams(
            dimension_semantics=("parallel", "parallel", "arbitrary"),
            vmem_limit_bytes=_vmem_limit_bytes(),
        ),
    )(qk, qk, v)

    return out[:, :, :N] if n_valid is not None else out


# ------------------------------- JAX glue ------------------------------------
def unfold_nchw(x, kh, kw, stride, padding):
    """F.unfold equivalent: (B,C,H,W) -> (B, N, C*kh*kw), channel-major features."""
    B, C, H, W = x.shape
    sh, sw = stride
    ph, pw = padding
    xp = jnp.pad(x, ((0, 0), (0, 0), (ph, ph), (pw, pw)))
    p1 = (H + 2 * ph - kh) // sh + 1
    p2 = (W + 2 * pw - kw) // sw + 1
    cols = []
    for i in range(kh):
        for j in range(kw):
            sub = xp[:, :, i:i + sh * (p1 - 1) + 1:sh, j:j + sw * (p2 - 1) + 1:sw]
            cols.append(sub)                               # (B, C, p1, p2)
    col = jnp.stack(cols, axis=2)                          # (B, C, kh*kw, p1, p2)
    col = col.reshape(B, C * kh * kw, p1 * p2)             # (B, D, N)
    return jnp.transpose(col, (0, 2, 1)), p1, p2           # (B, N, D)


class AttentionFromConvPallas:
    """Mirrors the PyTorch AttentionFromConv parameterization.

    to_q / to_k = eye(inner_dim_qk, dim) -> pure feature truncation (no matmul,
    no stored weight); to_out = eye(inner_dim) -> identity; to_v = reshaped conv
    weight, hoisted out of the attention kernel (V precomputed once)."""

    def __init__(self, im_height, im_width, conv_weight, kernel_size, stride,
                 padding, dim_head=1, scale=1.0, inner_dim_qk=None,
                 tile_q=None, tile_k=None):
        c_out, c_in, kh, kw = conv_weight.shape
        assert (kh, kw) == tuple(kernel_size)
        # to_v.weight = conv_weight.reshape(c_out, -1) only matches the declared
        # Linear(dim, dim_head*c_out) when dim_head == 1 (same limitation as the
        # exercised path of the PyTorch module).
        assert dim_head == 1
        dim = kh * kw * c_in
        if not inner_dim_qk:
            inner_dim_qk = dim
        self.dqk = min(inner_dim_qk, dim)   # eye(inner_dim_qk, dim) == truncate
        self.kernel_size = (kh, kw)
        self.stride = stride
        self.padding = padding
        self.c_out = c_out
        self.scale = float(scale)
        self.wv = jnp.asarray(conv_weight, jnp.float32).reshape(c_out, dim)
        self.tile_q = tile_q
        self.tile_k = tile_k
        self.p1 = (im_height + 2 * padding[0] - kh) // stride[0] + 1
        self.p2 = (im_width + 2 * padding[1] - kw) // stride[1] + 1

    def __call__(self, x):
        # TODO(synk): for large images, fuse the unfold + bf16 cast into the
        # kernel via index_map / manual DMA instead of materializing patches.
        kh, kw = self.kernel_size
        patches, p1, p2 = unfold_nchw(x, kh, kw, self.stride, self.padding)
        # to_v hoisted out of the kv loop: V computed once, cast for the MXU.
        v = jnp.einsum("bnd,cd->bnc", patches, self.wv).astype(jnp.bfloat16)
        # to_q / to_k narrowing done here, so the kernel only DMAs dqk columns.
        qk = patches if self.dqk == patches.shape[-1] else patches[..., :self.dqk]
        out = attention_from_conv_tokens(
            qk.astype(jnp.bfloat16), v, scale=self.scale,
            tq=self.tile_q, tk=self.tile_k)
        # Kernel already emits channels-first (B, C_out, N): reshape only.
        return out.reshape(x.shape[0], self.c_out, p1, p2)


def _reference_f32(x, conv_weight, kernel_size, stride, padding, scale, dqk):
    """Pure-JAX f32 reference of the PyTorch forward."""
    kh, kw = kernel_size
    patches, p1, p2 = unfold_nchw(x, kh, kw, stride, padding)
    q = patches[..., :dqk]     # eye(dqk, D) projection == truncation
    k = q
    c_out = conv_weight.shape[0]
    wv = conv_weight.reshape(c_out, -1)
    v = patches @ wv.T
    dots = jnp.einsum("bnd,bmd->bnm", q, k) * scale
    attn = jax.nn.softmax(dots, axis=-1)
    out = jnp.einsum("bnm,bmc->bnc", attn, v)
    return jnp.transpose(out, (0, 2, 1)).reshape(x.shape[0], c_out, p1, p2)


if __name__ == "__main__":
    key = jax.random.PRNGKey(0)
    k1, k2, k3, k4 = jax.random.split(key, 4)

    # --- Test 1: natural configuration (N=16, no padding, scale == 1) --------
    B, C_in, H, W = 2, 4, 16, 16
    C_out, KH, KW = 8, 4, 4
    stride, padding = (4, 4), (0, 0)
    x = 0.5 * jax.random.normal(k1, (B, C_in, H, W), dtype=jnp.float32)
    w = 0.1 * jax.random.normal(k2, (C_out, C_in, KH, KW), dtype=jnp.float32)

    mod = AttentionFromConvPallas(H, W, w, (KH, KW), stride, padding,
                                  dim_head=1, scale=1.0)
    out = jax.block_until_ready(mod(x))
    ref = _reference_f32(x, w, (KH, KW), stride, padding, 1.0, mod.dqk)
    assert out.shape == (B, C_out, 4, 4), out.shape
    assert jnp.allclose(out, ref, atol=5e-2, rtol=5e-2), "test1 mismatch"

    # --- Test 2: non-128-aligned N on 128-tiles (pad + KV mask path),
    #             truncated q/k features (inner_dim_qk < dim), scale != 1 -----
    B2, C2_in, H2, W2 = 2, 3, 20, 20
    C2_out, KH2, KW2 = 8, 4, 4
    stride2, padding2 = (2, 2), (1, 1)                  # -> p1=p2=10, N=100
    x2 = 0.5 * jax.random.normal(k3, (B2, C2_in, H2, W2), dtype=jnp.float32)
    w2 = 0.1 * jax.random.normal(k4, (C2_out, C2_in, KH2, KW2),
                                 dtype=jnp.float32)

    mod2 = AttentionFromConvPallas(H2, W2, w2, (KH2, KW2), stride2, padding2,
                                   dim_head=1, scale=0.5, inner_dim_qk=32,
                                   tile_q=128, tile_k=128)
    out2 = jax.block_until_ready(mod2(x2))
    ref2 = _reference_f32(x2, w2, (KH2, KW2), stride2, padding2, 0.5, mod2.dqk)
    assert out2.shape == (B2, C2_out, 10, 10), out2.shape
    assert jnp.allclose(out2, ref2, atol=5e-2, rtol=5e-2), "test2 mismatch"

    print("KERNEL_OK")
</pallas_src>

<mosaic_0001>
module attributes {stable_mosaic.version = 11 : i64} {
  func.func @_flash_attn_kernel(%arg0: i32, %arg1: i32, %arg2: i32, %arg3: memref<1x16x64xbf16, #tpu.memory_space<vmem>>, %arg4: memref<1x16x64xbf16, #tpu.memory_space<vmem>>, %arg5: memref<1x16x8xbf16, #tpu.memory_space<vmem>>, %arg6: memref<1x8x16xf32, #tpu.memory_space<vmem>>, %arg7: memref<1x16x1xf32, #tpu.memory_space<vmem>>, %arg8: memref<1x16x1xf32, #tpu.memory_space<vmem>>, %arg9: memref<1x16x8xf32, #tpu.memory_space<vmem>>) attributes {dimension_semantics = [#tpu.dimension_semantics<parallel>, #tpu.dimension_semantics<parallel>, #tpu.dimension_semantics<arbitrary>], iteration_bounds = array<i64: 2, 1, 1>, scalar_prefetch = 0 : i64, scratch_operands = 3 : i64, tpu.core_type = #tpu.core_type<tc>, window_params = [{transform_indices = @transform_0, window_bounds = array<i64: 1, 16, 64>}, {transform_indices = @transform_1, window_bounds = array<i64: 1, 16, 64>}, {transform_indices = @transform_2, window_bounds = array<i64: 1, 16, 8>}, {transform_indices = @transform_3, window_bounds = array<i64: 1, 8, 16>}]} {
    %c0_i32 = arith.constant 0 : i32
    %0 = arith.cmpi eq, %arg2, %c0_i32 : i32
    %1 = arith.extui %0 : i1 to i32
    %c0_i32_0 = arith.constant 0 : i32
    %2 = arith.cmpi ne, %1, %c0_i32_0 : i32
    scf.if %2 {
      %cst_32 = arith.constant 0xFF800000 : f32
      %33 = vector.broadcast %cst_32 : f32 to vector<1x16x1xf32>
      %c0_33 = arith.constant 0 : index
      %c0_34 = arith.constant 0 : index
      %c0_35 = arith.constant 0 : index
      %34 = vector.load %arg7[%c0_33, %c0_34, %c0_35] : memref<1x16x1xf32, #tpu.memory_space<vmem>>, vector<1x16x1xf32>
      tpu.vector_store %arg7[%c0_33, %c0_34, %c0_35], %33 {strides = array<i32>} : memref<1x16x1xf32, #tpu.memory_space<vmem>>, vector<1x16x1xf32>,
      %cst_36 = arith.constant 0.000000e+00 : f32
      %35 = vector.broadcast %cst_36 : f32 to vector<1x16x1xf32>
      %c0_37 = arith.constant 0 : index
      %c0_38 = arith.constant 0 : index
      %c0_39 = arith.constant 0 : index
      %36 = vector.load %arg8[%c0_37, %c0_38, %c0_39] : memref<1x16x1xf32, #tpu.memory_space<vmem>>, vector<1x16x1xf32>
      tpu.vector_store %arg8[%c0_37, %c0_38, %c0_39], %35 {strides = array<i32>} : memref<1x16x1xf32, #tpu.memory_space<vmem>>, vector<1x16x1xf32>,
      %cst_40 = arith.constant 0.000000e+00 : f32
      %37 = vector.broadcast %cst_40 : f32 to vector<1x16x8xf32>
      %c0_41 = arith.constant 0 : index
      %c0_42 = arith.constant 0 : index
      %c0_43 = arith.constant 0 : index
      %38 = vector.load %arg9[%c0_41, %c0_42, %c0_43] : memref<1x16x8xf32, #tpu.memory_space<vmem>>, vector<1x16x8xf32>
      tpu.vector_store %arg9[%c0_41, %c0_42, %c0_43], %37 {strides = array<i32>} : memref<1x16x8xf32, #tpu.memory_space<vmem>>, vector<1x16x8xf32>,
    } else {
    }
    %c0 = arith.constant 0 : index
    %c0_1 = arith.constant 0 : index
    %c0_2 = arith.constant 0 : index
    %3 = vector.load %arg3[%c0, %c0_1, %c0_2] : memref<1x16x64xbf16, #tpu.memory_space<vmem>>, vector<1x16x64xbf16>
    %c0_3 = arith.constant 0 : index
    %c0_4 = arith.constant 0 : index
    %c0_5 = arith.constant 0 : index
    %4 = vector.load %arg4[%c0_3, %c0_4, %c0_5] : memref<1x16x64xbf16, #tpu.memory_space<vmem>>, vector<1x16x64xbf16>
    "tpu.trace_start"() <{level = 10 : i32, message = "bqd,bkd->bqk"}> : () -> ()
    %cst = arith.constant dense<0.000000e+00> : vector<1x16x16xf32>
    %5 = tpu.matmul %3, %4, %cst {dimension_numbers = #tpu.dot_dimension_numbers<[2], [2], [1], [1], [0, 0, 0, 1, 1, 1], [0], [0]>} : vector<1x16x64xbf16>, vector<1x16x64xbf16>, vector<1x16x16xf32> -> vector<1x16x16xf32>
    "tpu.trace_stop"() : () -> ()
    %c0_6 = arith.constant 0 : index
    %c0_7 = arith.constant 0 : index
    %c0_8 = arith.constant 0 : index
    %6 = vector.load %arg7[%c0_6, %c0_7, %c0_8] : memref<1x16x1xf32, #tpu.memory_space<vmem>>, vector<1x16x1xf32>
    %cst_9 = arith.constant dense<0xFF800000> : vector<1x16xf32>
    %7 = vector.multi_reduction <maximumf>, %5, %cst_9 [2] : vector<1x16x16xf32> to vector<1x16xf32>
    %8 = vector.shape_cast %7 : vector<1x16xf32> to vector<1x16x1xf32>
    %9 = arith.maximumf %6, %8 : vector<1x16x1xf32>
    %10 = arith.subf %6, %9 : vector<1x16x1xf32>
    %11 = math.exp %10 : vector<1x16x1xf32>
    %12 = vector.broadcast %9 : vector<1x16x1xf32> to vector<1x16x16xf32>
    %13 = arith.subf %5, %12 : vector<1x16x16xf32>
    %14 = math.exp %13 : vector<1x16x16xf32>
    %c0_10 = arith.constant 0 : index
    %c0_11 = arith.constant 0 : index
    %c0_12 = arith.constant 0 : index
    %15 = vector.load %arg8[%c0_10, %c0_11, %c0_12] : memref<1x16x1xf32, #tpu.memory_space<vmem>>, vector<1x16x1xf32>
    %16 = arith.mulf %11, %15 : vector<1x16x1xf32>
    %cst_13 = arith.constant dense<0.000000e+00> : vector<1x16xf32>
    %17 = vector.multi_reduction <add>, %14, %cst_13 [2] : vector<1x16x16xf32> to vector<1x16xf32>
    %18 = vector.shape_cast %17 : vector<1x16xf32> to vector<1x16x1xf32>
    %19 = arith.addf %16, %18 : vector<1x16x1xf32>
    %c0_14 = arith.constant 0 : index
    %c0_15 = arith.constant 0 : index
    %c0_16 = arith.constant 0 : index
    %20 = vector.load %arg8[%c0_14, %c0_15, %c0_16] : memref<1x16x1xf32, #tpu.memory_space<vmem>>, vector<1x16x1xf32>
    tpu.vector_store %arg8[%c0_14, %c0_15, %c0_16], %19 {strides = array<i32>} : memref<1x16x1xf32, #tpu.memory_space<vmem>>, vector<1x16x1xf32>,
    %c0_17 = arith.constant 0 : index
    %c0_18 = arith.constant 0 : index
    %c0_19 = arith.constant 0 : index
    %21 = vector.load %arg9[%c0_17, %c0_18, %c0_19] : memref<1x16x8xf32, #tpu.memory_space<vmem>>, vector<1x16x8xf32>
    %22 = vector.broadcast %11 : vector<1x16x1xf32> to vector<1x16x8xf32>
    %23 = arith.mulf %22, %21 : vector<1x16x8xf32>
    %24 = arith.truncf %14 : vector<1x16x16xf32> to vector<1x16x16xbf16>
    %c0_20 = arith.constant 0 : index
    %c0_21 = arith.constant 0 : index
    %c0_22 = arith.constant 0 : index
    %25 = vector.load %arg5[%c0_20, %c0_21, %c0_22] : memref<1x16x8xbf16, #tpu.memory_space<vmem>>, vector<1x16x8xbf16>
    "tpu.trace_start"() <{level = 10 : i32, message = "bqk,bkc->bqc"}> : () -> ()
    %cst_23 = arith.constant dense<0.000000e+00> : vector<1x16x8xf32>
    %26 = tpu.matmul %24, %25, %cst_23 {dimension_numbers = #tpu.dot_dimension_numbers<[2], [1], [1], [2], [0, 0, 0, 1, 1, 2], [0], [0]>} : vector<1x16x16xbf16>, vector<1x16x8xbf16>, vector<1x16x8xf32> -> vector<1x16x8xf32>
    "tpu.trace_stop"() : () -> ()
    %27 = arith.addf %23, %26 : vector<1x16x8xf32>
    %c0_24 = arith.constant 0 : index
    %c0_25 = arith.constant 0 : index
    %c0_26 = arith.constant 0 : index
    %28 = vector.load %arg9[%c0_24, %c0_25, %c0_26] : memref<1x16x8xf32, #tpu.memory_space<vmem>>, vector<1x16x8xf32>
    tpu.vector_store %arg9[%c0_24, %c0_25, %c0_26], %27 {strides = array<i32>} : memref<1x16x8xf32, #tpu.memory_space<vmem>>, vector<1x16x8xf32>,
    %c0_27 = arith.constant 0 : index
    %c0_28 = arith.constant 0 : index
    %c0_29 = arith.constant 0 : index
    %29 = vector.load %arg7[%c0_27, %c0_28, %c0_29] : memref<1x16x1xf32, #tpu.memory_space<vmem>>, vector<1x16x1xf32>
    tpu.vector_store %arg7[%c0_27, %c0_28, %c0_29], %9 {strides = array<i32>} : memref<1x16x1xf32, #tpu.memory_space<vmem>>, vector<1x16x1xf32>,
    %c0_i32_30 = arith.constant 0 : i32
    %30 = arith.cmpi eq, %arg2, %c0_i32_30 : i32
    %31 = arith.extui %30 : i1 to i32
    %c0_i32_31 = arith.constant 0 : i32
    %32 = arith.cmpi ne, %31, %c0_i32_31 : i32
    scf.if %32 {
      %c0_32 = arith.constant 0 : index
      %c0_33 = arith.constant 0 : index
      %c0_34 = arith.constant 0 : index
      %33 = vector.load %arg9[%c0_32, %c0_33, %c0_34] : memref<1x16x8xf32, #tpu.memory_space<vmem>>, vector<1x16x8xf32>
      %c0_35 = arith.constant 0 : index
      %c0_36 = arith.constant 0 : index
      %c0_37 = arith.constant 0 : index
      %34 = vector.load %arg8[%c0_35, %c0_36, %c0_37] : memref<1x16x1xf32, #tpu.memory_space<vmem>>, vector<1x16x1xf32>
      %35 = tpu.reciprocal %34 {approx = true} : vector<1x16x1xf32> -> vector<1x16x1xf32>
      %36 = vector.broadcast %35 : vector<1x16x1xf32> to vector<1x16x8xf32>
      %37 = arith.mulf %33, %36 : vector<1x16x8xf32>
      %38 = tpu.transpose %37, [0, 2, 1] : vector<1x16x8xf32> -> vector<1x8x16xf32>
      %c0_38 = arith.constant 0 : index
      %c0_39 = arith.constant 0 : index
      %c0_40 = arith.constant 0 : index
      %39 = vector.load %arg6[%c0_38, %c0_39, %c0_40] : memref<1x8x16xf32, #tpu.memory_space<vmem>>, vector<1x8x16xf32>
      tpu.vector_store %arg6[%c0_38, %c0_39, %c0_40], %38 {strides = array<i32>} : memref<1x8x16xf32, #tpu.memory_space<vmem>>, vector<1x8x16xf32>,
    } else {
    }
    return
  }
  func.func @transform_0(%arg0: i32, %arg1: i32, %arg2: i32) -> (i32, i32, i32) {
    %c0_i32 = arith.constant 0 : i32
    %c0_i32_0 = arith.constant 0 : i32
    return %arg0, %arg1, %c0_i32 : i32, i32, i32
  }
  func.func @transform_1(%arg0: i32, %arg1: i32, %arg2: i32) -> (i32, i32, i32) {
    %c0_i32 = arith.constant 0 : i32
    %c0_i32_0 = arith.constant 0 : i32
    return %arg0, %arg2, %c0_i32 : i32, i32, i32
  }
  func.func @transform_2(%arg0: i32, %arg1: i32, %arg2: i32) -> (i32, i32, i32) {
    %c0_i32 = arith.constant 0 : i32
    %c0_i32_0 = arith.constant 0 : i32
    return %arg0, %arg2, %c0_i32 : i32, i32, i32
  }
  func.func @transform_3(%arg0: i32, %arg1: i32, %arg2: i32) -> (i32, i32, i32) {
    %c0_i32 = arith.constant 0 : i32
    %c0_i32_0 = arith.constant 0 : i32
    return %arg0, %c0_i32, %arg1 : i32, i32, i32
  }
}

</mosaic_0001>

<bundles_post_ra>
// kernel: tpu_custom_call.1
= control target key start
LH: loop header
LB: loop body
LE: loop exit
PB: predicated region body
PF: predicated region fallthrough
CT: control target
= control target key end

     0   :  { %8 = vsyncpa [#allocation6], 0  ;;  %s1114_s0 = inlined_call_operand.vmem [shape: bf16[2,16,64], index: 0, kind: input, shape index: {}]   ;;  %s1115_s1 = inlined_call_operand.hbm [shape: bf16[2,16,64], index: 1, kind: input, shape index: {}]   ;;  %s1116_s2 = inlined_call_operand.vmem [shape: bf16[2,16,8], index: 2, kind: input, shape index: {}]   ;;  %s1117_s3 = inlined_call_operand.hbm [shape: f32[2,8,16], index: 3, kind: output, shape index: {}]  }
   0x1   :  { %10 = vsyncpa [#allocation6 + $0x1], 0 }
   0x2   :  { %11 = vsyncpa [#allocation7], 0 }
   0x3   :  { %13 = vsyncpa [#allocation7 + $0x1], 0  ;;  %s939_s12 = smov 0   ;;  %s941_s13 = smov 0  }
   0x4   :  { %s943_s14 = smov 0   ;;  %s945_s15 = smov 0  }
   0x5   :  { %s947_s16 = smov 0   ;;  %s949_s17 = smov 0  }
   0x6 LB: > { %s674_s18 = sadd.s32 4294967295, %s909_s17   ;;  %s675_s19 = sadd.s32 4294967294, %s909_s17   ;;  %s909_s17 = sphi %s949_s17, %s19_s17   ;;  %s905_s16 = sphi %s947_s16, %s1128_s16   ;;  %s901_s15 = sphi %s945_s15, %s1127_s15   ;;  %s897_s14 = sphi %s943_s14, %s1126_s14   ;;  %s893_s13 = sphi %s941_s13, %s1125_s13   ;;  %s889_s12 = sphi %s939_s12, %s1124_s12  }
   0x7   : > { %s38_s20 = sadd.s32 1, %s905_s16  ;;  %s75_s21 = sadd.s32 1, %s897_s14 }
   0x8   : > { %p40_p0 = scmp.ge.s32.totalorder %s38_s20, 2  ;;  %p82_p1 = scmp.ne.s32.totalorder %s897_s14, %s893_s13 }
   0x9   : > { %p83_p2 = scmp.eq.s32.totalorder %s909_s17, 0  ;;  %p88_p3 = scmp.ne.s32.totalorder %s893_s13, %s889_s12 }
   0xa   : > { %s1130_s20 = smov (%p40_p0, %s38_s20), 0  ;;  %p89_p5 = scmp.eq.s32.totalorder %s674_s18, 0 }
   0xb   : > { %p980_p4 = por %p83_p2, %p82_p1  ;;  %s70_s23 = ssub.s32 %s905_s16, %s1130_s20 }
   0xc   : > { %p142_p6 = scmp.eq.s32.totalorder %s674_s18, 1  ;;  %p73_p7 = scmp.eq.s32.totalorder %s70_s23, 0 }
   0xd   : > { %p986_p8 = por %p89_p5, %p88_p3  ;;  %p148_p10 = scmp.eq.s32.totalorder %s675_s19, 1 }
   0xe   : > { %p990_p9 = por %p142_p6, %p82_p1  ;;  %p728_p13 = scmp.lt.s32.totalorder %s909_s17, 2 }
   0xf   : > { %s995_s26 = scalar_select %p73_p7, %s897_s14, %s75_s21  }
  0x10   : > { %p997_p11 = por %p148_p10, %p88_p3  ;;  %s181_s28 = sand.u32 1, %s897_s14  }
  0x11   : > { %s678_s29 = sshll.u32 %s181_s28, 3  ;;  %s697_s30 = sshll.u32 %s905_s16, 7 }
  0x12   : > { %s193_s6 = scalar_lea.hbm %s1115_s1, %s697_s30  ;;  %s185_s7 = scalar_lea.vmem [#allocation5], %s678_s29 }
  0x13   : > { %s194_s8 = sshll.u32 %s185_s7, 4  ;;  %p1010_p0 = pnand %p728_p13, %p980_p4  ;;  %s195_s8 = int_to_ptr.vmem [resolvable:$true] %s194_s8 }
  0x14   : > { %p681_p1 = scmp.ge.s32.totalorder %s909_s17, 1  ;;  %s182_s10 = scalar_lea.sflag [#allocation6], %s181_s28 }
  0x15   : > { %p803_p2 = pneg %p1010_p0  ;;  %s814_s11 = scalar_lea.vmem %s195_s8, 128 }
  0x16   : > { %p815_p3 = scmp.ne.s32.totalorder %s195_s8, %s814_s11  ;;  %s911_s18 = smov [#allocation5]  }
  0x17   : > { %s819_s19 = sshll.u32 %s911_s18, 4  ;;  %s820_s19 = int_to_ptr.vmem [resolvable:$false] %s819_s19 }
  0x18   : > { %p817_p5 = pnand %p815_p3, %p803_p2  ;;  %s821_s21 = scalar_lea.vmem %s820_s19, 256 }
  0x19   : > { %p822_p7 = scmp.lt.s32.totalorder %s195_s8, %s820_s19  ;;  %p823_p10 = scmp.lt.s32.totalorder %s821_s21, %s814_s11 }
  0x1a   : > { %p818_p6 = pneg %p817_p5 }
  0x1b   : > { %p824_p12 = por %p823_p10, %p822_p7 }
  0x1d   : > { %p825_p4 = pnand %p824_p12, %p818_p6 }
  0x1f   : > { %828 = shalt.err (!%p825_p4)
}
  0x20   : > { %s912_s22 = smov 64   ;;  %s913_s23 = smov 4  }
  0x21   : > { %723 = dma.hbm_to_vmem [thread:$0]  (!%p1010_p0), %s193_s6, 128, %s195_s8, %s182_s10, %s912_s22, %s912_s22, %s913_s23  }
  0x22   : > { %p215_p13 = scmp.lt.s32.totalorder %s909_s17, 3 }
  0x24   : > { %p216_p2 = pnand %p681_p1, %p215_p13 }
  0x25   : > { %s1023_s28 = sand.u32 (!%p216_p2), 1, %s893_s13  }
  0x26   : > { %219 = sbr.rel (%p216_p2) target bundleno = 957 (0x3bd), region = 32  ;;  %s682_s29 = sshll.u32 (!%p216_p2), %s1023_s28, 3 }
  0x27   : > { %s222_s30 = scalar_lea.sflag (!%p216_p2), [#allocation6], %s1023_s28  ;;  %s225_s4 = scalar_lea.vmem (!%p216_p2), [#allocation5], %s682_s29 }
  0x2b   : > { %880 = dma.done.wait (%p986_p8), %s222_s30, 128  }
  0x2c   : > { %882 = vsyncadd (%p986_p8), %s222_s30, 4294967168  ;;  %vm297_vm0 = vcmask 64512   ;;  %p267_p12 = scmp.lt.s32.totalorder %s901_s15, 1  ;;  %v914_v0 = vmov 0.0   ;;  %vm915_vm1 = vmmov 0   ;;  %vm314_vm2 = vcmask 523264  }
  0x2d   : > { %298 = vst.msk [vmem:[#allocation4] sm:$0xff] %vm297_vm0, %v914_v0  ;;  %299 = vst.msk [vmem:[#allocation4 + $0x8] sm:$0xff] %vm297_vm0, %v914_v0  ;;  %704 = vmatprep.subr.bf16.mxu0 %v914_v0  ;;  %706 = vmatprep.mubr.msk.bf16.mxu0 %vm915_vm1, %v914_v0  ;;  %v786_v1 = vld [vmem:[%s225_s4] sm:$0xff]   ;;  %vm292_vm3 = vcmask 7168   ;;  %v916_v4 = vmov -inf   ;;  %vm364_vm4 = vcmask 130048  }
  0x2e   : > { %s1037_s5 = scalar_select %p267_p12, %s901_s15, 1  ;;  %710 = vmatprep.subr.bf16.mxu1 %v914_v0  ;;  %712 = vmatprep.mubr.msk.bf16.mxu1 %vm915_vm1, %v914_v0  ;;  %v319_v2 = vsel %vm314_vm2, %v786_v1, 0  ;;  %293 = vst.msk [vmem:[#allocation2] sm:$0xff] %vm292_vm3, %v916_v4  ;;  %294 = vst.msk [vmem:[#allocation2 + $0x8] sm:$0xff] %vm292_vm3, %v916_v4  ;;  %v917_v11 = vmov 0  }
  0x2f   : > { %705 = vmatpush3.bf16.xpose.msra.mxu0 %v319_v2  ;;  %295 = vst.msk [vmem:[#allocation3] sm:$0xff] %vm292_vm3, %v914_v0  ;;  %296 = vst.msk [vmem:[#allocation3 + $0x8] sm:$0xff] %vm292_vm3, %v914_v0  ;;  %784 = vset.pattern.permute.xlu1 %v917_v11  ;;  %s694_s18 = sshll.u32 %s901_s15, 7  ;;  %s265_s19 = scalar_lea.vmem [#allocation8], %s682_s29 }
  0x30   : > { %s698_s24 = sshll.u32 %s1037_s5, 3  ;;  %785 = vset.pattern.permute.xlu0 %v917_v11  ;;  %s553_s21 = sshll.u32 %s265_s19, 4  ;;  %s554_s21 = int_to_ptr.vmem [resolvable:$true] %s553_s21 }
  0x31   : > { %s274_s8 = scalar_lea.vmem %s1114_s0, %s698_s24  ;;  %s285_s11 = scalar_lea.vmem %s1116_s2, %s698_s24 }
  0x32   : > { %v787_v3 = vld [vmem:[%s274_s8] sm:$0xff]   ;;  %s1071_s30 = scalar_lea.hbm %s1117_s3, %s694_s18  ;;  %s539_s4 = scalar_lea.sflag [#allocation7], %s1023_s28 }
  0x33   : > { %v788_v20 = vld [vmem:[%s285_s11] sm:$0xff]   ;;  %s829_s5 = scalar_lea.vmem %s554_s21, 128  ;;  %s918_s24 = smov [#allocation8]  }
  0x34   : > { %711 = vmatpush3.bf16.msra.mxu1 %v788_v20  ;;  %v410_v48 = vld [vmem:[#allocation4] sm:$0xff]  ;;  %v411_v51 = vld [vmem:[#allocation4 + $0x8] sm:$0xff]  ;;  %p830_p8 = scmp.ne.s32.totalorder %s554_s21, %s829_s5  ;;  %s833_s15 = sshll.u32 %s918_s24, 4  ;;  %s834_s15 = int_to_ptr.vmem [resolvable:$false] %s833_s15 }
  0x35   : > { %v362_v12 = vld [vmem:[#allocation2] sm:$0xff]  ;;  %v363_v15 = vld [vmem:[#allocation2 + $0x8] sm:$0xff]  ;;  %s835_s29 = scalar_lea.vmem %s834_s15, 256  ;;  %p836_p3 = scmp.lt.s32.totalorder %s554_s21, %s834_s15 }
  0x36   : > { %707 = vmatmul.mubr.msk.bf16.vlgmr.msra.gmra.mxu0 %vm314_vm2, %v787_v3  ;;  %v395_v36 = vld [vmem:[#allocation3] sm:$0xff]  ;;  %v396_v39 = vld [vmem:[#allocation3 + $0x8] sm:$0xff]  ;;  %p831_p0 = pnand %p830_p8, %p990_p9  ;;  %p837_p5 = scmp.lt.s32.totalorder %s835_s29, %s829_s5 }
  0x38   : > { %p832_p1 = pneg %p831_p0  ;;  %p838_p6 = por %p837_p5, %p836_p3 }
  0x3a   : > { %p839_p7 = pnand %p838_p6, %p832_p1 }
  0xf6   : > { %v355_v5 = vpop.f32.mrf.mxu0 }
  0xf7   : > { %v365_v6 = vsel %vm364_vm4, %v355_v5, -inf }
  0xf8   : > { %366 = vmax.xlane.f32.xlu0 %v365_v6  ;;  %v708_v7 = vpop.f32.mrf.mxu0 }
  0xfa   : > { %v358_v8 = vpop.f32.mrf.mxu0 }
  0xfb   : > { %v368_v9 = vsel %vm364_vm4, %v358_v8, -inf }
  0xfc   : > { %369 = vmax.xlane.f32.xlu0 %v368_v9  ;;  %v709_v10 = vpop.f32.mrf.mxu0 }
 0x181   : > { %v367_v13 = vpop.xlane.xlu0 %366 }
 0x182   : > { %v371_v14 = vmax.f32 %v362_v12, %v367_v13 }
 0x184   : > { %v373_v16 = vsub.f32 %v362_v12, %v371_v14  ;;  %482 = vst.msk [vmem:[#allocation2] sm:$0xff] %vm292_vm3, %v371_v14  ;;  %381 = vperm.xlu1 %784, %v371_v14  }
 0x185   : > { %v370_v17 = vpop.xlane.xlu0 %369 }
 0x186   : > { %v372_v18 = vmax.f32 %v363_v15, %v370_v17  ;;  %v375_v33 = vmul.f32 1.442695, %v373_v16 }
 0x188   : > { %v374_v19 = vsub.f32 %v363_v15, %v372_v18  ;;  %483 = vst.msk [vmem:[#allocation2 + $0x8] sm:$0xff] %vm292_vm3, %v372_v18  ;;  %386 = vperm.xlu1 %784, %v372_v18  }
 0x18a   : > { %v377_v30 = vmul.f32 1.442695, %v374_v19 }
 0x1ff   : > { %v382_v21 = vpop.permute.xlu1 %381 }
 0x200   : > { %v389_v22 = vsub.f32 %v355_v5, %v382_v21 }
 0x202   : > { %v391_v23 = vmul.f32 1.442695, %v389_v22 }
 0x203   : > { %v387_v24 = vpop.permute.xlu1 %386 }
 0x204   : > { %789 = vpow2.f32 %v391_v23  ;;  %v390_v25 = vsub.f32 %v358_v8, %v387_v24 }
 0x206   : > { %v393_v26 = vmul.f32 1.442695, %v390_v25 }
 0x208   : > { %791 = vpow2.f32 %v393_v26 }
 0x209   : > { %793 = vpow2.f32 %v377_v30 }
 0x20a   : > { %795 = vpow2.f32 %v375_v33 }
 0x211   : > { %v790_v27 = vpop.eup %789 }
 0x212   : > { %v399_v28 = vsel %vm364_vm4, %v790_v27, 0.0 }
 0x213   : > { %400 = vadd.xlane.f32.xlu0 %v399_v28 }
 0x215   : > { %v792_v29 = vpop.eup %791 }
 0x216   : > { %v402_v31 = vsel %vm364_vm4, %v792_v29, 0.0  ;;  %v424_v32 = vpack.c.bf16 %v792_v29, %v790_v27  ;;  %v794_v34 = vpop.eup %793 }
 0x217   : > { %403 = vadd.xlane.f32.xlu1 %v402_v31  ;;  %v796_v35 = vpop.eup %795  ;;  %v398_v41 = vmul.f32 %v794_v34, %v396_v39 }
 0x218   : > { %713 = vmatmul.mubr.msk.bf16.vlgmr.msra.gmra.mxu1 %vm364_vm4, %v424_v32  ;;  %v397_v37 = vmul.f32 %v796_v35, %v395_v36 }
 0x228   : > { %419 = vperm.xlu1 %784, %v794_v34  }
 0x229   : > { %414 = vperm.xlu0 %785, %v796_v35  }
 0x29c   : > { %v401_v38 = vpop.xlane.xlu0 %400 }
 0x29d   : > { %v405_v40 = vadd.f32 %v401_v38, %v397_v37 }
 0x29f   : > { %408 = vst.msk [vmem:[#allocation3] sm:$0xff] %vm292_vm3, %v405_v40 }
 0x2a0   : > { %v404_v42 = vpop.xlane.xlu1 %403 }
 0x2a1   : > { %v406_v43 = vadd.f32 %v404_v42, %v398_v41 }
 0x2a3   : > { %409 = vst.msk [vmem:[#allocation3 + $0x8] sm:$0xff] %vm292_vm3, %v406_v43 }
 0x2a4   : > { %v415_v49 = vpop.permute.xlu0 %414  ;;  %v420_v52 = vpop.permute.xlu1 %419 }
 0x2a5   : > { %v422_v50 = vmul.f32 %v415_v49, %v410_v48  ;;  %v423_v56 = vmul.f32 %v420_v52, %v411_v51 }
 0x2a6   : > { %v489_v44 = vld [vmem:[#allocation3] sm:$0xff] }
 0x2a7   : > { %797 = vrcp.f32 %v489_v44 }
 0x2aa   : > { %v490_v45 = vld [vmem:[#allocation3 + $0x8] sm:$0xff] }
 0x2ab   : > { %799 = vrcp.f32 %v490_v45 }
 0x2b4   : > { %v798_v46 = vpop.eup %797 }
 0x2b5   : > { %495 = vperm.xlu0 %785, %v798_v46  }
 0x2b8   : > { %v800_v47 = vpop.eup %799 }
 0x2b9   : > { %500 = vperm.xlu0 %785, %v800_v47  }
 0x2d8   : > { %v470_v53 = vpop.f32.mrf.mxu1 }
 0x2d9   : > { %v477_v54 = vadd.f32 %v470_v53, %v422_v50 }
 0x2da   : > { %v714_v55 = vpop.f32.mrf.mxu1 }
 0x2db   : > { %480 = vst.msk [vmem:[#allocation4] sm:$0xff] %vm297_vm0, %v477_v54 }
 0x2dc   : > { %v473_v57 = vpop.f32.mrf.mxu1 }
 0x2dd   : > { %v478_v58 = vadd.f32 %v473_v57, %v423_v56 }
 0x2de   : > { %v715_v59 = vpop.f32.mrf.mxu1 }
 0x2df   : > { %481 = vst.msk [vmem:[#allocation4 + $0x8] sm:$0xff] %vm297_vm0, %v478_v58 }
 0x2e2   : > { %v487_v60 = vld [vmem:[#allocation4] sm:$0xff] }
 0x2e6   : > { %v488_v63 = vld [vmem:[#allocation4 + $0x8] sm:$0xff] }
 0x330   : > { %v496_v61 = vpop.permute.xlu0 %495 }
 0x331   : > { %v503_v62 = vmul.f32 %v496_v61, %v487_v60 }
 0x333   : > { %505 = vxpose.xlu1.b32.start [1/2] (short) (narrow) %v503_v62, 8 }
 0x334   : > { %v501_v0 = vpop.permute.xlu0 %500 }
 0x335   : > { %v504_v1 = vmul.f32 %v501_v0, %v488_v63 }
 0x337   : > { %506 = vxpose.xlu1.b32.end [2/2] (short) (narrow) %v504_v1, 8 }
 0x3af   : > { %v521_v2 = vpop.trf.xlu1 }
 0x3b0   : > { %537 = vst.msk [vmem:[%s265_s19] sm:$0xff] %vm364_vm4, %v521_v2 }
 0x3b1   : > { %842 = shalt.err (!%p839_p7)
}
 0x3b2   : > { %s843_s6 = scalar_lea.hbm %s1071_s30, 128  ;;  %s847_s8 = scalar_lea.hbm %s1117_s3, 256 }
 0x3b3   : > { %p844_p10 = scmp.ne.s32.totalorder %s1071_s30, %s843_s6  ;;  %p848_p2 = scmp.lt.s32.totalorder %s1071_s30, %s1117_s3 }
 0x3b4   : > { %p849_p12 = scmp.lt.s32.totalorder %s847_s8, %s843_s6 }
 0x3b5   : > { %p845_p4 = pnand %p844_p10, %p990_p9 }
 0x3b6   : > { %p850_p8 = por %p849_p12, %p848_p2 }
 0x3b7   : > { %p846_p13 = pneg %p845_p4 }
 0x3b9   : > { %p851_p0 = pnand %p850_p8, %p846_p13 }
 0x3bb   : > { %854 = shalt.err (!%p851_p0)
}
 0x3bc   : > { %718 = dma.vmem_to_hbm [thread:$0]  (%p990_p9), %s554_s21, 128, %s1071_s30, %s539_s4  }
 0x3bd PF: > { %s565_s11 = sand.u32 1, %s889_s12   ;;  %p1123_p1 = scmp.ge.s32.totalorder %s909_s17, 2 }
 0x3be   : > { %s566_s18 = scalar_lea.sflag [#allocation7], %s565_s11 }
 0x3bf   : > { %p725_p3 = pnand %p1123_p1, %p997_p11 }
 0x3c1   : > { %p726_p5 = pneg %p725_p3 }
 0x3c3   : > { %884 = dma.done.wait (%p726_p5), %s566_s18, 128  }
 0x3c4   : > { %886 = vsyncadd (%p726_p5), %s566_s18, 4294967168  ;;  %s19_s17 = sadd.s32 1, %s909_s17   ;;  %s1124_s12 = smov %s893_s13 }
 0x3c5   : > { %p16_p6 = scmp.ge.s32.totalorder %s19_s17, 4   ;;  %s1125_s13 = smov %s897_s14 }
 0x3c6   : > { %s1126_s14 = smov %s995_s26  ;;  %s1127_s15 = smov %s905_s16 }
 0x3c7   : > { %s1128_s16 = smov %s1130_s20  ;;  %18 = sbr.rel (!%p16_p6) target bundleno = 6 (0x6), region = 91 }
 0x3cc   :  { %571 = vsyncpa [#allocation6], 1 }
 0x3cd   :  { %573 = vsyncpa [#allocation6 + $0x1], 1 }
 0x3ce   :  { %574 = vsyncpa [#allocation7], 1 }
 0x3cf   :  { %576 = vsyncpa [#allocation7 + $0x1], 1 }

</bundles_post_ra>
